<compile_context>
chip_gen: v5e
topology: v5e:2x2
jax: 0.10.0
libtpu: 0.0.40
codegen_flags: <defaults>
</compile_context>

<pallas_src>
import jax
import jax.numpy as jnp
from jax.experimental import pallas as pl
from jax.experimental.pallas import tpu as pltpu


# ------------------------------- Pallas kernel -------------------------------

def _attention_kernel(x_ref, g_ref, wx_ref, wg_ref, wpsi_ref, b1_ref, b2_ref,
                      o_ref):
    """Fused attention gate on one (C, t_hw) spatial tile (NCHW layout).

    x_ref, g_ref, o_ref : (C, t_hw)  activations (x doubles as identity path)
    w*_ref              : (C, C)     bf16 1x1-conv weights, (Cout, Cin) layout
    b1_ref              : (C, 1) f32 bx + bg (wx and wg biases combined)
    b2_ref              : (C, 1) f32 psi bias
    """
    xb = x_ref[...].astype(jnp.bfloat16)
    gb = g_ref[...].astype(jnp.bfloat16)

    # wx(x) + wg(g) + (bx + bg), then ReLU  -- two bf16 MXU matmuls, f32 acc.
    h = jnp.dot(wx_ref[...], xb, preferred_element_type=jnp.float32)
    h = h + jnp.dot(wg_ref[...], gb, preferred_element_type=jnp.float32)
    h = jnp.maximum(h + b1_ref[...], 0.0)

    # psi(.) + bias, sigmoid, gate the identity (re-read x_ref: no long f32
    # live range across the three matmuls).
    z = jnp.dot(wpsi_ref[...], h.astype(jnp.bfloat16),
                preferred_element_type=jnp.float32) + b2_ref[...]
    s = pl.reciprocal(1.0 + jnp.exp(-z), approx=True)      # sigmoid on EUP
    o_ref[...] = (x_ref[...].astype(jnp.float32) * s).astype(o_ref.dtype)


# ------------------------------ Pallas wrapper --------------------------------

def _round_up(v, m):
    return (v + m - 1) // m * m


def _choose_tile_hw(hw, c, itemsize, act_budget_bytes):
    """Largest lane-tile (multiple of 128) whose double-buffered x/g/out tiles
    fit `act_budget_bytes`, and that exactly divides the (128-padded) HW."""
    t_max = max(128, (act_budget_bytes // (6 * c * itemsize)) // 128 * 128)
    hw_p = _round_up(hw, 128)
    t = min(t_max, hw_p)
    while hw_p % t != 0:            # terminates: 128 always divides hw_p
        t -= 128
    return t, hw_p


def attention_forward(params, x, g):
    """Matches Attention.forward: x, g are NCHW; returns NCHW (same dtype)."""
    N, C, H, W = x.shape
    HW = H * W
    dtype = x.dtype
    itemsize = jnp.dtype(dtype).itemsize

    # NCHW view (N, C, H*W): contiguous merge of trailing dims -> no HBM pass.
    xf = x.reshape(N, C, HW)
    gf = g.reshape(N, C, HW)

    # Generation-aware VMEM budget (v5e/v6e: 128 MiB, v7x: 64 MiB).
    try:
        vmem_cap = int(pltpu.get_tpu_info().vmem_capacity_bytes)
    except Exception:
        vmem_cap = 64 * 1024 * 1024

    # Resident weights/biases: (Cout, Cin) bf16, biases as (C, 1) columns.
    wx = params["wx"]["w"].astype(jnp.bfloat16)
    wg = params["wg"]["w"].astype(jnp.bfloat16)
    wpsi = params["psi"]["w"].astype(jnp.bfloat16)
    b1 = (params["wx"]["b"] + params["wg"]["b"]).reshape(C, 1).astype(jnp.float32)
    b2 = params["psi"]["b"].reshape(C, 1).astype(jnp.float32)

    weight_bytes = 3 * C * C * 2 + 2 * C * 4        # single-buffered weights
    act_budget = max(6 * C * 128 * itemsize,
                     min(vmem_cap // 2, 64 << 20) - weight_bytes)
    t_hw, hw_p = _choose_tile_hw(HW, C, itemsize, act_budget)
    n_hw = hw_p // t_hw

    # v7x has 2 TensorCores: prefer an even total grid-step count.
    if (N * n_hw) % 2 == 1 and t_hw % 256 == 0 and t_hw > 128:
        t_hw //= 2
        n_hw = hw_p // t_hw

    if hw_p != HW:                                   # lane-pad spatial axis
        pad = hw_p - HW
        xf = jnp.pad(xf, ((0, 0), (0, 0), (0, pad)))
        gf = jnp.pad(gf, ((0, 0), (0, 0), (0, pad)))

    # VMEM: single-buffered weights + double-buffered biases + double-buffered
    # x/g/out activation tiles + compiler headroom, capped per generation.
    vmem_need = (weight_bytes + 2 * (2 * C * 4)
                 + 2 * 3 * C * t_hw * itemsize)
    vmem_limit = int(min(int(vmem_cap * 0.85),
                         max(32 << 20, vmem_need + (16 << 20))))

    const_spec = lambda shape: pl.BlockSpec(shape, lambda n, j: (0, 0),
                                            pipeline_mode=pl.Buffered(1))

    out = pl.pallas_call(
        _attention_kernel,
        out_shape=jax.ShapeDtypeStruct((N, C, hw_p), dtype),
        grid=(N, n_hw),
        in_specs=[
            pl.BlockSpec((None, C, t_hw), lambda n, j: (n, 0, j)),  # x tile
            pl.BlockSpec((None, C, t_hw), lambda n, j: (n, 0, j)),  # g tile
            const_spec((C, C)),                                     # wx
            const_spec((C, C)),                                     # wg
            const_spec((C, C)),                                     # wpsi
            pl.BlockSpec((C, 1), lambda n, j: (0, 0)),              # bx + bg
            pl.BlockSpec((C, 1), lambda n, j: (0, 0)),              # bpsi
        ],
        out_specs=pl.BlockSpec((None, C, t_hw), lambda n, j: (n, 0, j)),
        compiler_params=pltpu.CompilerParams(
            dimension_semantics=("parallel", "parallel"),
            vmem_limit_bytes=vmem_limit),
    )(xf, gf, wx, wg, wpsi, b1, b2)

    # TODO(synk): for very large channel counts (C >~ 1024 on v7x) add a K grid
    #             axis over C with an f32 VMEM accumulator instead of keeping
    #             the full (C, C) weights resident.
    if hw_p != HW:
        out = out[:, :, :HW]
    return out.reshape(N, C, H, W)


# -------------------------------- parameters ----------------------------------

def init_attention_params(key, ch):
    """Three 1x1 convs (wx, wg, psi); weights stored as (Cout, Cin) matrices
    (the squeezed PyTorch Conv2d weight layout)."""
    params = {}
    for name in ("wx", "wg", "psi"):
        key, kw, kb = jax.random.split(key, 3)
        params[name] = dict(
            w=jax.random.normal(kw, (ch, ch), jnp.float32) / jnp.sqrt(float(ch)),
            b=0.1 * jax.random.normal(kb, (ch,), jnp.float32),
        )
    return params


# ----------------------------- pure-JAX reference ------------------------------

def attention_forward_ref(params, x, g):
    """f32 HIGHEST-precision reference, straight NCHW (matches the nn.Module:
    all three 1x1 convs are C->C, sigmoid applied per channel)."""
    hp = jax.lax.Precision.HIGHEST

    def conv1x1(p, t):
        return (jnp.einsum("oi,nihw->nohw", p["w"].astype(jnp.float32),
                           t.astype(jnp.float32), precision=hp)
                + p["b"][None, :, None, None])

    h = jnp.maximum(conv1x1(params["wx"], x) + conv1x1(params["wg"], g), 0.0)
    z = conv1x1(params["psi"], h)
    return x.astype(jnp.float32) * jax.nn.sigmoid(z)


# ------------------------------------ main -------------------------------------

if __name__ == "__main__":
    key = jax.random.PRNGKey(0)
    kp, kx, kg = jax.random.split(key, 3)

    N, ch, H, W = 2, 64, 16, 16                     # Attention(ch=64)
    x = jax.random.normal(kx, (N, ch, H, W), jnp.float32)
    g = jax.random.normal(kg, (N, ch, H, W), jnp.float32)
    params = init_attention_params(kp, ch)

    fwd = jax.jit(attention_forward)
    out = jax.block_until_ready(fwd(params, x, g))

    ref = attention_forward_ref(params, x, g)
    assert out.shape == ref.shape, (out.shape, ref.shape)
    max_err = float(jnp.max(jnp.abs(out - ref)))
    assert jnp.allclose(out, ref, rtol=2e-2, atol=2e-2), max_err

    print("KERNEL_OK")
</pallas_src>

<mosaic_0001>
module attributes {stable_mosaic.version = 11 : i64} {
  func.func @_attention_kernel(%arg0: i32, %arg1: i32, %arg2: memref<1x64x256xf32, #tpu.memory_space<vmem>>, %arg3: memref<1x64x256xf32, #tpu.memory_space<vmem>>, %arg4: memref<64x64xbf16, #tpu.memory_space<vmem>>, %arg5: memref<64x64xbf16, #tpu.memory_space<vmem>>, %arg6: memref<64x64xbf16, #tpu.memory_space<vmem>>, %arg7: memref<64x1xf32, #tpu.memory_space<vmem>>, %arg8: memref<64x1xf32, #tpu.memory_space<vmem>>, %arg9: memref<1x64x256xf32, #tpu.memory_space<vmem>>) attributes {dimension_semantics = [#tpu.dimension_semantics<parallel>, #tpu.dimension_semantics<parallel>], iteration_bounds = array<i64: 2, 1>, scalar_prefetch = 0 : i64, scratch_operands = 0 : i64, tpu.core_type = #tpu.core_type<tc>, window_params = [{transform_indices = @transform_0, window_bounds = array<i64: 1, 64, 256>}, {transform_indices = @transform_1, window_bounds = array<i64: 1, 64, 256>}, {pipeline_mode = #tpu.pipeline_mode<synchronous>, transform_indices = @transform_2, window_bounds = array<i64: 64, 64>}, {pipeline_mode = #tpu.pipeline_mode<synchronous>, transform_indices = @transform_3, window_bounds = array<i64: 64, 64>}, {pipeline_mode = #tpu.pipeline_mode<synchronous>, transform_indices = @transform_4, window_bounds = array<i64: 64, 64>}, {pipeline_mode = #tpu.pipeline_mode<synchronous>, transform_indices = @transform_5, window_bounds = array<i64: 64, 1>}, {pipeline_mode = #tpu.pipeline_mode<synchronous>, transform_indices = @transform_6, window_bounds = array<i64: 64, 1>}, {transform_indices = @transform_7, window_bounds = array<i64: 1, 64, 256>}]} {
    %c0 = arith.constant 0 : index
    %c0_0 = arith.constant 0 : index
    %c0_1 = arith.constant 0 : index
    %0 = vector.load %arg2[%c0, %c0_0, %c0_1] : memref<1x64x256xf32, #tpu.memory_space<vmem>>, vector<1x64x256xf32>
    %1 = vector.shape_cast %0 : vector<1x64x256xf32> to vector<64x256xf32>
    %2 = arith.truncf %1 : vector<64x256xf32> to vector<64x256xbf16>
    %c0_2 = arith.constant 0 : index
    %c0_3 = arith.constant 0 : index
    %c0_4 = arith.constant 0 : index
    %3 = vector.load %arg3[%c0_2, %c0_3, %c0_4] : memref<1x64x256xf32, #tpu.memory_space<vmem>>, vector<1x64x256xf32>
    %4 = vector.shape_cast %3 : vector<1x64x256xf32> to vector<64x256xf32>
    %5 = arith.truncf %4 : vector<64x256xf32> to vector<64x256xbf16>
    %c0_5 = arith.constant 0 : index
    %c0_6 = arith.constant 0 : index
    %6 = vector.load %arg4[%c0_5, %c0_6] : memref<64x64xbf16, #tpu.memory_space<vmem>>, vector<64x64xbf16>
    %cst = arith.constant dense<0.000000e+00> : vector<64x256xf32>
    %7 = tpu.matmul %6, %2, %cst {dimension_numbers = #tpu.dot_dimension_numbers<[1], [0], [0], [1], [0, 0, 1, 1], [], []>} : vector<64x64xbf16>, vector<64x256xbf16>, vector<64x256xf32> -> vector<64x256xf32>
    %c0_7 = arith.constant 0 : index
    %c0_8 = arith.constant 0 : index
    %8 = vector.load %arg5[%c0_7, %c0_8] : memref<64x64xbf16, #tpu.memory_space<vmem>>, vector<64x64xbf16>
    %cst_9 = arith.constant dense<0.000000e+00> : vector<64x256xf32>
    %9 = tpu.matmul %8, %5, %cst_9 {dimension_numbers = #tpu.dot_dimension_numbers<[1], [0], [0], [1], [0, 0, 1, 1], [], []>} : vector<64x64xbf16>, vector<64x256xbf16>, vector<64x256xf32> -> vector<64x256xf32>
    %10 = arith.addf %7, %9 : vector<64x256xf32>
    %c0_10 = arith.constant 0 : index
    %c0_11 = arith.constant 0 : index
    %11 = vector.load %arg7[%c0_10, %c0_11] : memref<64x1xf32, #tpu.memory_space<vmem>>, vector<64x1xf32>
    %12 = vector.broadcast %11 : vector<64x1xf32> to vector<64x256xf32>
    %13 = arith.addf %10, %12 : vector<64x256xf32>
    %cst_12 = arith.constant 0.000000e+00 : f32
    %14 = vector.broadcast %cst_12 : f32 to vector<64x256xf32>
    %15 = arith.maximumf %13, %14 : vector<64x256xf32>
    %c0_13 = arith.constant 0 : index
    %c0_14 = arith.constant 0 : index
    %16 = vector.load %arg6[%c0_13, %c0_14] : memref<64x64xbf16, #tpu.memory_space<vmem>>, vector<64x64xbf16>
    %17 = arith.truncf %15 : vector<64x256xf32> to vector<64x256xbf16>
    %cst_15 = arith.constant dense<0.000000e+00> : vector<64x256xf32>
    %18 = tpu.matmul %16, %17, %cst_15 {dimension_numbers = #tpu.dot_dimension_numbers<[1], [0], [0], [1], [0, 0, 1, 1], [], []>} : vector<64x64xbf16>, vector<64x256xbf16>, vector<64x256xf32> -> vector<64x256xf32>
    %c0_16 = arith.constant 0 : index
    %c0_17 = arith.constant 0 : index
    %19 = vector.load %arg8[%c0_16, %c0_17] : memref<64x1xf32, #tpu.memory_space<vmem>>, vector<64x1xf32>
    %20 = vector.broadcast %19 : vector<64x1xf32> to vector<64x256xf32>
    %21 = arith.addf %18, %20 : vector<64x256xf32>
    %cst_18 = arith.constant 0.000000e+00 : f32
    %22 = vector.broadcast %cst_18 : f32 to vector<64x256xf32>
    %23 = arith.subf %22, %21 : vector<64x256xf32>
    %24 = math.exp %23 : vector<64x256xf32>
    %cst_19 = arith.constant 1.000000e+00 : f32
    %25 = vector.broadcast %cst_19 : f32 to vector<64x256xf32>
    %26 = arith.addf %25, %24 : vector<64x256xf32>
    %27 = tpu.reciprocal %26 {approx = true} : vector<64x256xf32> -> vector<64x256xf32>
    %c0_20 = arith.constant 0 : index
    %c0_21 = arith.constant 0 : index
    %c0_22 = arith.constant 0 : index
    %28 = vector.load %arg2[%c0_20, %c0_21, %c0_22] : memref<1x64x256xf32, #tpu.memory_space<vmem>>, vector<1x64x256xf32>
    %29 = vector.shape_cast %28 : vector<1x64x256xf32> to vector<64x256xf32>
    %30 = arith.mulf %29, %27 : vector<64x256xf32>
    %c0_23 = arith.constant 0 : index
    %c0_24 = arith.constant 0 : index
    %c0_25 = arith.constant 0 : index
    %31 = vector.load %arg9[%c0_23, %c0_24, %c0_25] : memref<1x64x256xf32, #tpu.memory_space<vmem>>, vector<1x64x256xf32>
    %32 = vector.shape_cast %31 : vector<1x64x256xf32> to vector<64x256xf32>
    %33 = vector.shape_cast %30 : vector<64x256xf32> to vector<1x64x256xf32>
    tpu.vector_store %arg9[%c0_23, %c0_24, %c0_25], %33 {strides = array<i32>} : memref<1x64x256xf32, #tpu.memory_space<vmem>>, vector<1x64x256xf32>,
    return
  }
  func.func @transform_0(%arg0: i32, %arg1: i32) -> (i32, i32, i32) {
    %c0_i32 = arith.constant 0 : i32
    %c0_i32_0 = arith.constant 0 : i32
    return %arg0, %c0_i32, %arg1 : i32, i32, i32
  }
  func.func @transform_1(%arg0: i32, %arg1: i32) -> (i32, i32, i32) {
    %c0_i32 = arith.constant 0 : i32
    %c0_i32_0 = arith.constant 0 : i32
    return %arg0, %c0_i32, %arg1 : i32, i32, i32
  }
  func.func @transform_2(%arg0: i32, %arg1: i32) -> (i32, i32) {
    %c0_i32 = arith.constant 0 : i32
    %c0_i32_0 = arith.constant 0 : i32
    %c0_i32_1 = arith.constant 0 : i32
    return %c0_i32, %c0_i32_0 : i32, i32
  }
  func.func @transform_3(%arg0: i32, %arg1: i32) -> (i32, i32) {
    %c0_i32 = arith.constant 0 : i32
    %c0_i32_0 = arith.constant 0 : i32
    %c0_i32_1 = arith.constant 0 : i32
    return %c0_i32, %c0_i32_0 : i32, i32
  }
  func.func @transform_4(%arg0: i32, %arg1: i32) -> (i32, i32) {
    %c0_i32 = arith.constant 0 : i32
    %c0_i32_0 = arith.constant 0 : i32
    %c0_i32_1 = arith.constant 0 : i32
    return %c0_i32, %c0_i32_0 : i32, i32
  }
  func.func @transform_5(%arg0: i32, %arg1: i32) -> (i32, i32) {
    %c0_i32 = arith.constant 0 : i32
    %c0_i32_0 = arith.constant 0 : i32
    %c0_i32_1 = arith.constant 0 : i32
    return %c0_i32, %c0_i32_0 : i32, i32
  }
  func.func @transform_6(%arg0: i32, %arg1: i32) -> (i32, i32) {
    %c0_i32 = arith.constant 0 : i32
    %c0_i32_0 = arith.constant 0 : i32
    %c0_i32_1 = arith.constant 0 : i32
    return %c0_i32, %c0_i32_0 : i32, i32
  }
  func.func @transform_7(%arg0: i32, %arg1: i32) -> (i32, i32, i32) {
    %c0_i32 = arith.constant 0 : i32
    %c0_i32_0 = arith.constant 0 : i32
    return %arg0, %c0_i32, %arg1 : i32, i32, i32
  }
}

</mosaic_0001>

<bundles_post_ra>
// kernel: attention_forward.1
= control target key start
LH: loop header
LB: loop body
LE: loop exit
PB: predicated region body
PF: predicated region fallthrough
CT: control target
= control target key end

     0   :  { %s1316_s24 = smov 0   ;;  %s1318_s25 = smov 0   ;;  %s1589_s0 = inlined_call_operand.vmem [shape: f32[2,64,256], index: 0, kind: input, shape index: {}]   ;;  %s1590_s1 = inlined_call_operand.vmem [shape: f32[2,64,256], index: 1, kind: input, shape index: {}]   ;;  %s1591_s2 = inlined_call_operand.vmem [shape: bf16[64,64], index: 2, kind: input, shape index: {}]   ;;  %s1592_s3 = inlined_call_operand.vmem [shape: bf16[64,64], index: 3, kind: input, shape index: {}]   ;;  %s1593_s4 = inlined_call_operand.vmem [shape: bf16[64,64], index: 4, kind: input, shape index: {}]   ;;  %s1594_s5 = inlined_call_operand.vmem [shape: f32[64,1], index: 5, kind: input, shape index: {}]   ;;  %s1595_s6 = inlined_call_operand.vmem [shape: f32[64,1], index: 6, kind: input, shape index: {}]   ;;  %s1596_s7 = inlined_call_operand.vmem [shape: f32[2,64,256], index: 7, kind: output, shape index: {}]  }
   0x1   :  { %s1320_s26 = smov 0  }
   0x2 LB: > { %s29_s27 = sadd.s32 1, %s1269_s25  ;;  %p1055_p0 = scmp.ge.s32.totalorder %s1273_s26, 1  ;;  %s1273_s26 = sphi %s1320_s26, %s17_s26   ;;  %s1269_s25 = sphi %s1318_s25, %s1598_s25   ;;  %s1265_s24 = sphi %s1316_s24, %s1597_s24  }
   0x3   : > { %p31_p1 = scmp.ge.s32.totalorder %s29_s27, 2  ;;  %p275_p2 = scmp.lt.s32.totalorder %s1273_s26, 3 }
   0x5   : > { %s1600_s27 = smov (%p31_p1, %s29_s27), 0  ;;  %p276_p3 = pnand %p1055_p0, %p275_p2 }
   0x6   : > { %p325_p4 = scmp.lt.s32.totalorder (!%p276_p3), %s1265_s24, 1 }
   0x7   : > { %279 = sbr.rel (%p276_p3) target bundleno = 485 (0x1e5), region = 48 }
   0xc   : > { %s1602_s24 = smov (!%p325_p4, %s1265_s24), 1  ;;  %v1145_v32 = vld [vmem:[%s1592_s3 + $0x10] sm:$0xff]  ;;  %vm439_vm0 = vcmask 523264   ;;  %v1143_v42 = vld [vmem:[%s1592_s3] sm:$0xff]  ;;  %v1275_v44 = vmov 0   ;;  %v607_v53 = vld [vmem:[%s1594_s5 + $0x38] sm:$0xff] }
   0xd   : > { %s1334_s28 = sshll.u32 %s1602_s24, 7  ;;  %v606_v41 = vld [vmem:[%s1594_s5 + $0x30] sm:$0xff]  ;;  %1184 = vset.pattern.permute.xlu0 %v1275_v44  ;;  %v604_v48 = vld [vmem:[%s1594_s5 + $0x20] sm:$0xff]  ;;  %1185 = vset.pattern.permute.xlu1 %v1275_v44  ;;  %v1146_v54 = vld [vmem:[%s1592_s3 + $0x18] sm:$0xff] }
   0xe   : > { %s1340_s8 = scalar_lea.vmem %s1590_s1, %s1334_s28  ;;  %s1358_s11 = scalar_lea.vmem %s1589_s0, %s1334_s28  ;;  %640 = vperm.xlu0 %1184, %v606_v41   ;;  %1186 = vset.pattern.permute.xlu2 %v1275_v44  ;;  %v605_v55 = vld [vmem:[%s1594_s5 + $0x28] sm:$0xff]  ;;  %v600_v56 = vld [vmem:[%s1594_s5] sm:$0xff]  ;;  %v602_v62 = vld [vmem:[%s1594_s5 + $0x10] sm:$0xff] }
   0xf   : > { %v391_v0 = vld [vmem:[%s1340_s8 + $0x60] sm:$0xff]  ;;  %v393_v1 = vld [vmem:[%s1340_s8 + $0x70] sm:$0xff]  ;;  %v392_v2 = vld [vmem:[%s1340_s8 + $0x68] sm:$0xff]  ;;  %630 = vperm.xlu1 %1185, %v604_v48   ;;  %620 = vperm.xlu2 %1186, %v602_v62   ;;  %s1546_s13 = scalar_lea.vmem %s1596_s7, %s1334_s28 }
  0x10   : > { %v401_v3 = vpack.c.bf16 %v393_v1, %v391_v0  ;;  %v394_v4 = vld [vmem:[%s1340_s8 + $0x78] sm:$0xff]  ;;  %v387_v5 = vld [vmem:[%s1340_s8 + $0x40] sm:$0xff]  ;;  %v389_v6 = vld [vmem:[%s1340_s8 + $0x50] sm:$0xff] }
  0x11   : > { %v402_v7 = vpack.c.bf16 %v394_v4, %v392_v2  ;;  %v388_v8 = vld [vmem:[%s1340_s8 + $0x48] sm:$0xff]  ;;  %v390_v9 = vld [vmem:[%s1340_s8 + $0x58] sm:$0xff]  ;;  %v399_v10 = vpack.c.bf16 %v389_v6, %v387_v5  ;;  %v383_v12 = vld [vmem:[%s1340_s8 + $0x20] sm:$0xff] }
  0x12   : > { %1151 = vmatpush.bf16.msra.mxu2 %v401_v3  ;;  %456 = vmatpush.bf16.msra.mxu0 %v401_v3  ;;  %v400_v11 = vpack.c.bf16 %v390_v9, %v388_v8  ;;  %v385_v13 = vld [vmem:[%s1340_s8 + $0x30] sm:$0xff]  ;;  %v384_v14 = vld [vmem:[%s1340_s8 + $0x28] sm:$0xff]  ;;  %v386_v15 = vld [vmem:[%s1340_s8 + $0x38] sm:$0xff] }
  0x13   : > { %1155 = vmatpush.bf16.msra.mxu3 %v402_v7  ;;  %485 = vmatpush.bf16.msra.mxu1 %v402_v7  ;;  %v397_v16 = vpack.c.bf16 %v385_v13, %v383_v12  ;;  %v398_v17 = vpack.c.bf16 %v386_v15, %v384_v14  ;;  %v379_v18 = vld [vmem:[%s1340_s8] sm:$0xff]  ;;  %v381_v19 = vld [vmem:[%s1340_s8 + $0x10] sm:$0xff]  ;;  %v380_v20 = vld [vmem:[%s1340_s8 + $0x8] sm:$0xff] }
  0x14   : > { %v382_v21 = vld [vmem:[%s1340_s8 + $0x18] sm:$0xff]  ;;  %v1365_v22 = vld [vmem:[%s1358_s11 + $0x60] sm:$0xff]  ;;  %v1368_v23 = vld [vmem:[%s1358_s11 + $0x70] sm:$0xff]  ;;  %v395_v26 = vpack.c.bf16 %v381_v19, %v379_v18 }
  0x15   : > { %v1371_v24 = vld [vmem:[%s1358_s11 + $0x68] sm:$0xff]  ;;  %v1374_v25 = vld [vmem:[%s1358_s11 + $0x78] sm:$0xff]  ;;  %v396_v27 = vpack.c.bf16 %v382_v21, %v380_v20  ;;  %v377_v28 = vpack.c.bf16 %v1368_v23, %v1365_v22  ;;  %v1381_v30 = vld [vmem:[%s1358_s11 + $0x40] sm:$0xff] }
  0x16   : > { %1152 = vmatpush.bf16.msra.mxu2 %v399_v10  ;;  %457 = vmatpush.bf16.msra.mxu0 %v399_v10  ;;  %v378_v29 = vpack.c.bf16 %v1374_v25, %v1371_v24  ;;  %v1384_v31 = vld [vmem:[%s1358_s11 + $0x50] sm:$0xff]  ;;  %v1390_v33 = vld [vmem:[%s1358_s11 + $0x48] sm:$0xff]  ;;  %v1393_v34 = vld [vmem:[%s1358_s11 + $0x58] sm:$0xff] }
  0x17   : > { %1156 = vmatpush.bf16.msra.mxu3 %v400_v11  ;;  %486 = vmatpush.bf16.msra.mxu1 %v400_v11  ;;  %v375_v35 = vpack.c.bf16 %v1384_v31, %v1381_v30  ;;  %v376_v36 = vpack.c.bf16 %v1393_v34, %v1390_v33  ;;  %v1400_v37 = vld [vmem:[%s1358_s11 + $0x20] sm:$0xff]  ;;  %v1403_v38 = vld [vmem:[%s1358_s11 + $0x30] sm:$0xff]  ;;  %v1407_v39 = vld [vmem:[%s1358_s11 + $0x28] sm:$0xff] }
  0x18   : > { %v1410_v40 = vld [vmem:[%s1358_s11 + $0x38] sm:$0xff]  ;;  %v373_v43 = vpack.c.bf16 %v1403_v38, %v1400_v37  ;;  %v1424_v46 = vld [vmem:[%s1358_s11] sm:$0xff]  ;;  %v1427_v47 = vld [vmem:[%s1358_s11 + $0x10] sm:$0xff]  ;;  %645 = vperm.xlu0 %1184, %v607_v53   ;;  %635 = vperm.xlu1 %1185, %v605_v55  }
  0x19   : > { %v374_v45 = vpack.c.bf16 %v1410_v40, %v1407_v39  ;;  %v1433_v49 = vld [vmem:[%s1358_s11 + $0x8] sm:$0xff]  ;;  %v1436_v50 = vld [vmem:[%s1358_s11 + $0x18] sm:$0xff]  ;;  %v371_v51 = vpack.c.bf16 %v1427_v47, %v1424_v46  ;;  %v1139_v59 = vld [vmem:[%s1591_s2] sm:$0xff] }
  0x1a   : > { %1153 = vmatpush.bf16.msra.mxu2 %v397_v16  ;;  %458 = vmatpush.bf16.msra.mxu0 %v397_v16  ;;  %v372_v52 = vpack.c.bf16 %v1436_v50, %v1433_v49  ;;  %v1144_v57 = vld [vmem:[%s1592_s3 + $0x8] sm:$0xff]  ;;  %v698_v63 = vld [vmem:[%s1595_s6 + $0x10] sm:$0xff]  ;;  %v700_v0 = vld [vmem:[%s1595_s6 + $0x20] sm:$0xff] }
  0x1b   : > { %1157 = vmatpush.bf16.msra.mxu3 %v398_v17  ;;  %487 = vmatpush.bf16.msra.mxu1 %v398_v17  ;;  %v601_v58 = vld [vmem:[%s1594_s5 + $0x8] sm:$0xff]  ;;  %v603_v1 = vld [vmem:[%s1594_s5 + $0x18] sm:$0xff]  ;;  %v1141_v3 = vld [vmem:[%s1591_s2 + $0x10] sm:$0xff] }
  0x1c   : > { %v1140_v60 = vld [vmem:[%s1591_s2 + $0x8] sm:$0xff]  ;;  %625 = vperm.xlu2 %1186, %v603_v1   ;;  %v703_v4 = vld [vmem:[%s1595_s6 + $0x38] sm:$0xff]  ;;  %v696_v5 = vld [vmem:[%s1595_s6] sm:$0xff] }
  0x1d   : > { %v697_v61 = vld [vmem:[%s1595_s6 + $0x8] sm:$0xff]  ;;  %v699_v6 = vld [vmem:[%s1595_s6 + $0x18] sm:$0xff]  ;;  %v702_v8 = vld [vmem:[%s1595_s6 + $0x30] sm:$0xff] }
  0x1e   : > { %1154 = vmatpush.bf16.msra.mxu2 %v395_v26  ;;  %459 = vmatpush.bf16.msra.mxu0 %v395_v26  ;;  %v701_v2 = vld [vmem:[%s1595_s6 + $0x28] sm:$0xff]  ;;  %v1142_v7 = vld [vmem:[%s1591_s2 + $0x18] sm:$0xff] }
  0x1f   : > { %1158 = vmatpush.bf16.msra.mxu3 %v396_v27  ;;  %488 = vmatpush.bf16.msra.mxu1 %v396_v27 }
  0x20   : > { %610 = vperm.xlu0 %1184, %v600_v56   ;;  %615 = vperm.xlu1 %1185, %v601_v58  }
  0x21   : > { %1080 = vmatmul.msk.bf16.vlgmr.msra.gmra.mxu2 %vm439_vm0, %v1145_v32  ;;  %1078 = vmatmul.msk.bf16.vlgmr.msra.gmra.mxu0 %vm439_vm0, %v1143_v42 }
  0x22   : > { %546 = vmatpush.bf16.msrb.mxu2 %v377_v28  ;;  %1084 = vmatmul.msk.bf16.vlgmr.msra.gmra.mxu3 %vm439_vm0, %v1145_v32 }
  0x23   : > { %575 = vmatpush.bf16.msrb.mxu3 %v378_v29  ;;  %1082 = vmatmul.msk.bf16.vlgmr.msra.gmra.mxu1 %vm439_vm0, %v1143_v42 }
  0x24   : > { %706 = vperm.xlu2 %1186, %v696_v5  }
  0x26   : > { %547 = vmatpush.bf16.msrb.mxu2 %v375_v35 }
  0x27   : > { %576 = vmatpush.bf16.msrb.mxu3 %v376_v36 }
  0x28   : > { %711 = vperm.xlu0 %1184, %v697_v61   ;;  %716 = vperm.xlu1 %1185, %v698_v63  }
  0x2a   : > { %548 = vmatpush.bf16.msrb.mxu2 %v373_v43 }
  0x2b   : > { %577 = vmatpush.bf16.msrb.mxu3 %v374_v45 }
  0x2c   : > { %721 = vperm.xlu2 %1186, %v699_v6  }
  0x2e   : > { %549 = vmatpush.bf16.msrb.mxu2 %v371_v51 }
  0x2f   : > { %578 = vmatpush.bf16.msrb.mxu3 %v372_v52 }
  0x30   : > { %726 = vperm.xlu0 %1184, %v700_v0   ;;  %731 = vperm.xlu1 %1185, %v701_v2  }
  0x31   : > { %1081 = vmatmul.msk.bf16.gmra.mxu2 %vm439_vm0, %v1146_v54  ;;  %1079 = vmatmul.msk.bf16.gmra.mxu0 %vm439_vm0, %v1144_v57 }
  0x32   : > { %1085 = vmatmul.msk.bf16.gmra.mxu3 %vm439_vm0, %v1146_v54 }
  0x33   : > { %1083 = vmatmul.msk.bf16.gmra.mxu1 %vm439_vm0, %v1144_v57 }
  0x34   : > { %736 = vperm.xlu2 %1186, %v702_v8  }
  0x38   : > { %741 = vperm.xlu0 %1184, %v703_v4  }
  0x41   : > { %1102 = vmatmul.msk.bf16.vlgmr.msrb.gmra.mxu2 %vm439_vm0, %v1139_v59 }
  0x42   : > { %1106 = vmatmul.msk.bf16.vlgmr.msrb.gmra.mxu3 %vm439_vm0, %v1139_v59 }
  0x51   : > { %1103 = vmatmul.msk.bf16.gmra.mxu2 %vm439_vm0, %v1140_v60 }
  0x52   : > { %1107 = vmatmul.msk.bf16.gmra.mxu3 %vm439_vm0, %v1140_v60 }
  0x61   : > { %1104 = vmatmul.msk.bf16.gmra.mxu2 %vm439_vm0, %v1141_v3 }
  0x62   : > { %1108 = vmatmul.msk.bf16.gmra.mxu3 %vm439_vm0, %v1141_v3 }
  0x69   : > { %v621_v6 = vpop.permute.xlu2 %620 }
  0x71   : > { %1105 = vmatmul.msk.bf16.gmra.mxu2 %vm439_vm0, %v1142_v7 }
  0x72   : > { %1109 = vmatmul.msk.bf16.gmra.mxu3 %vm439_vm0, %v1142_v7 }
  0x80   : > { %v641_v59 = vpop.permute.xlu0 %640 }
  0x81   : > { %v631_v35 = vpop.permute.xlu1 %630 }
  0x8a   : > { %v636_v54 = vpop.permute.xlu1 %635 }
  0x9e   : > { %v461_v29 = vpop.f32.mrf.mxu0 }
  0xa0   : > { %v490_v32 = vpop.f32.mrf.mxu1 }
  0xa4   : > { %v471_v9 = vpop.f32.mrf.mxu2 }
  0xa5   : > { %v500_v10 = vpop.f32.mrf.mxu3 }
  0xa6   : > { %v463_v42 = vpop.f32.mrf.mxu0 }
  0xa8   : > { %v492_v43 = vpop.f32.mrf.mxu1 }
  0xac   : > { %v473_v11 = vpop.f32.mrf.mxu2 }
  0xad   : > { %v502_v12 = vpop.f32.mrf.mxu3 }
  0xae   : > { %v466_v62 = vpop.f32.mrf.mxu0 }
  0xb0   : > { %v495_v1 = vpop.f32.mrf.mxu1 }
  0xb4   : > { %v476_v13 = vpop.f32.mrf.mxu2 }
  0xb5   : > { %v505_v14 = vpop.f32.mrf.mxu3 }
  0xbc   : > { %v478_v15 = vpop.f32.mrf.mxu2 }
  0xbd   : > { %v507_v16 = vpop.f32.mrf.mxu3 }
  0xc4   : > { %v1516_v17 = vpop.f32.mrf.mxu2 }
  0xc5   : > { %v1518_v18 = vpop.f32.mrf.mxu3 }
  0xcc   : > { %v553_v19 = vpop.f32.mrf.mxu2 }
  0xcd   : > { %v582_v20 = vpop.f32.mrf.mxu3 }
  0xd4   : > { %v556_v21 = vpop.f32.mrf.mxu2 }
  0xd5   : > { %v585_v26 = vpop.f32.mrf.mxu3 }
  0xdc   : > { %v558_v27 = vpop.f32.mrf.mxu2 }
  0xdd   : > { %v587_v28 = vpop.f32.mrf.mxu3 }
  0xe4   : > { %v561_v36 = vpop.f32.mrf.mxu2 }
  0xe5   : > { %v590_v41 = vpop.f32.mrf.mxu3  ;;  %v562_v44 = vadd.f32 %v561_v36, %v471_v9  ;;  %v646_v9 = vpop.permute.xlu0 %645 }
  0xe6   : > { %v591_v45 = vadd.f32 %v590_v41, %v500_v10  ;;  %v468_v10 = vpop.f32.mrf.mxu0 }
  0xe7   : > { %v656_v51 = vadd.f32 %v631_v35, %v562_v44 }
  0xe8   : > { %v657_v55 = vadd.f32 %v631_v35, %v591_v45 }
  0xe9   : > { %v672_v60 = vmax.f32 %v656_v51, 0.0 }
  0xea   : > { %v673_v63 = vmax.f32 %v657_v55, 0.0  ;;  %v557_v55 = vadd.f32 %v556_v21, %v466_v62 }
  0xec   : > { %v563_v48 = vpop.f32.mrf.mxu2 }
  0xed   : > { %v564_v52 = vadd.f32 %v563_v48, %v473_v11  ;;  %v592_v53 = vpop.f32.mrf.mxu3  ;;  %v559_v48 = vadd.f32 %v558_v27, %v468_v10  ;;  %v652_v27 = vadd.f32 %v621_v6, %v557_v55 }
  0xee   : > { %v593_v56 = vadd.f32 %v592_v53, %v502_v12  ;;  %v497_v12 = vpop.f32.mrf.mxu1  ;;  %v626_v53 = vpop.permute.xlu2 %625 }
  0xef   : > { %v658_v57 = vadd.f32 %v636_v54, %v564_v52  ;;  %v588_v52 = vadd.f32 %v587_v28, %v497_v12  ;;  %v581_v28 = vadd.f32 %v1518_v18, %v490_v32  ;;  %v1150_v12 = vld [vmem:[%s1593_s4 + $0x18] sm:$0xff] }
  0xf0   : > { %v659_v58 = vadd.f32 %v636_v54, %v593_v56 }
  0xf1   : > { %v674_v61 = vmax.f32 %v658_v57, 0.0 }
  0xf2   : > { %v675_v0 = vmax.f32 %v659_v58, 0.0  ;;  %v586_v58 = vadd.f32 %v585_v26, %v495_v1 }
  0xf3   : > { %v692_v2 = vpack.c.bf16 %v674_v61, %v672_v60  ;;  %v554_v60 = vadd.f32 %v553_v19, %v463_v42  ;;  %v654_v61 = vadd.f32 %v626_v53, %v559_v48  ;;  %v668_v42 = vmax.f32 %v652_v27, 0.0 }
  0xf4   : > { %v566_v3 = vpop.f32.mrf.mxu2  ;;  %v693_v4 = vpack.c.bf16 %v675_v0, %v673_v63  ;;  %v583_v0 = vadd.f32 %v582_v20, %v492_v43  ;;  %v653_v21 = vadd.f32 %v621_v6, %v586_v58 }
  0xf5   : > { %v595_v5 = vpop.f32.mrf.mxu3  ;;  %v567_v7 = vadd.f32 %v566_v3, %v476_v13  ;;  %v616_v3 = vpop.permute.xlu1 %615  ;;  %v670_v26 = vmax.f32 %v654_v61, 0.0 }
  0xf6   : > { %v596_v8 = vadd.f32 %v595_v5, %v505_v14  ;;  %v650_v62 = vadd.f32 %v616_v3, %v554_v60  ;;  %v651_v1 = vadd.f32 %v616_v3, %v583_v0  ;;  %v669_v43 = vmax.f32 %v653_v21, 0.0 }
  0xf7   : > { %v660_v35 = vadd.f32 %v641_v59, %v567_v7 }
  0xf8   : > { %v661_v44 = vadd.f32 %v641_v59, %v596_v8  ;;  %v611_v59 = vpop.permute.xlu0 %610  ;;  %v666_v8 = vmax.f32 %v650_v62, 0.0 }
  0xf9   : > { %v676_v56 = vmax.f32 %v660_v35, 0.0  ;;  %v649_v20 = vadd.f32 %v611_v59, %v581_v28  ;;  %v707_v35 = vpop.permute.xlu2 %706 }
  0xfa   : > { %v677_v13 = vmax.f32 %v661_v44, 0.0 }
  0xfb   : > { %v665_v18 = vmax.f32 %v649_v20, 0.0 }
  0xfc   : > { %v568_v11 = vpop.f32.mrf.mxu2 }
  0xfd   : > { %v569_v36 = vadd.f32 %v568_v11, %v478_v15  ;;  %v597_v41 = vpop.f32.mrf.mxu3  ;;  %v655_v15 = vadd.f32 %v626_v53, %v588_v52  ;;  %v1147_v11 = vld [vmem:[%s1593_s4] sm:$0xff] }
  0xfe   : > { %v598_v45 = vadd.f32 %v597_v41, %v507_v16  ;;  %v552_v16 = vadd.f32 %v1516_v17, %v461_v29  ;;  %v667_v17 = vmax.f32 %v651_v1, 0.0 }
  0xff   : > { %v662_v51 = vadd.f32 %v646_v9, %v569_v36  ;;  %v671_v7 = vmax.f32 %v655_v15, 0.0 }
 0x100   : > { %v663_v54 = vadd.f32 %v646_v9, %v598_v45  ;;  %v648_v19 = vadd.f32 %v611_v59, %v552_v16  ;;  %v690_v9 = vpack.c.bf16 %v670_v26, %v668_v42  ;;  %v689_v6 = vpack.c.bf16 %v667_v17, %v665_v18 }
 0x101   : > { %v678_v57 = vmax.f32 %v662_v51, 0.0  ;;  %v691_v29 = vpack.c.bf16 %v671_v7, %v669_v43 }
 0x102   : > { %v679_v14 = vmax.f32 %v663_v54, 0.0  ;;  %v664_v10 = vmax.f32 %v648_v19, 0.0  ;;  %v712_v54 = vpop.permute.xlu0 %711 }
 0x103   : > { %v694_v63 = vpack.c.bf16 %v678_v57, %v676_v56 }
 0x104   : > { %v695_v5 = vpack.c.bf16 %v679_v14, %v677_v13  ;;  %v688_v32 = vpack.c.bf16 %v666_v8, %v664_v10 }
 0x105   : > { %780 = vmatpush.bf16.msrb.mxu0 %v694_v63 }
 0x106   : > { %809 = vmatpush.bf16.msrb.mxu1 %v695_v5  ;;  %v717_v5 = vpop.permute.xlu1 %716 }
 0x109   : > { %781 = vmatpush.bf16.msrb.mxu0 %v692_v2  ;;  %v1148_v2 = vld [vmem:[%s1593_s4 + $0x8] sm:$0xff] }
 0x10a   : > { %810 = vmatpush.bf16.msrb.mxu1 %v693_v4  ;;  %v1149_v4 = vld [vmem:[%s1593_s4 + $0x10] sm:$0xff] }
 0x10d   : > { %782 = vmatpush.bf16.msrb.mxu0 %v690_v9  ;;  %v722_v9 = vpop.permute.xlu2 %721 }
 0x10e   : > { %811 = vmatpush.bf16.msrb.mxu1 %v691_v29 }
 0x111   : > { %783 = vmatpush.bf16.msrb.mxu0 %v688_v32 }
 0x112   : > { %812 = vmatpush.bf16.msrb.mxu1 %v689_v6 }
 0x114   : > { %1126 = vmatmul.msk.bf16.vlgmr.msrb.gmra.mxu0 %vm439_vm0, %v1147_v11 }
 0x115   : > { %1130 = vmatmul.msk.bf16.vlgmr.msrb.gmra.mxu1 %vm439_vm0, %v1147_v11 }
 0x124   : > { %1127 = vmatmul.msk.bf16.gmra.mxu0 %vm439_vm0, %v1148_v2 }
 0x125   : > { %1131 = vmatmul.msk.bf16.gmra.mxu1 %vm439_vm0, %v1148_v2 }
 0x134   : > { %1128 = vmatmul.msk.bf16.gmra.mxu0 %vm439_vm0, %v1149_v4 }
 0x135   : > { %1132 = vmatmul.msk.bf16.gmra.mxu1 %vm439_vm0, %v1149_v4 }
 0x144   : > { %1129 = vmatmul.msk.bf16.gmra.mxu0 %vm439_vm0, %v1150_v12 }
 0x145   : > { %1133 = vmatmul.msk.bf16.gmra.mxu1 %vm439_vm0, %v1150_v12 }
 0x191   : > { %v785_v36 = vpop.f32.mrf.mxu0 }
 0x192   : > { %v786_v41 = vadd.f32 %v785_v36, %v707_v35  ;;  %v814_v44 = vpop.f32.mrf.mxu1 }
 0x193   : > { %v815_v45 = vadd.f32 %v814_v44, %v707_v35  ;;  %v727_v44 = vpop.permute.xlu0 %726 }
 0x194   : > { %v834_v48 = vsub.f32 0.0, %v786_v41 }
 0x195   : > { %v835_v51 = vsub.f32 0.0, %v815_v45 }
 0x196   : > { %v850_v52 = vmul.f32 1.442695, %v834_v48 }
 0x197   : > { %v852_v53 = vmul.f32 1.442695, %v835_v51 }
 0x198   : > { %1187 = vpow2.f32 %v850_v52 }
 0x199   : > { %1189 = vpow2.f32 %v852_v53  ;;  %v787_v55 = vpop.f32.mrf.mxu0 }
 0x19a   : > { %v788_v56 = vadd.f32 %v787_v55, %v712_v54  ;;  %v816_v57 = vpop.f32.mrf.mxu1 }
 0x19b   : > { %v817_v58 = vadd.f32 %v816_v57, %v712_v54 }
 0x19c   : > { %v836_v13 = vsub.f32 0.0, %v788_v56 }
 0x19d   : > { %v837_v14 = vsub.f32 0.0, %v817_v58 }
 0x19e   : > { %v1188_v60 = vpop.eup %1187  ;;  %v854_v61 = vmul.f32 1.442695, %v836_v13 }
 0x19f   : > { %v1190_v63 = vpop.eup %1189  ;;  %v882_v0 = vadd.f32 1.0, %v1188_v60  ;;  %v856_v3 = vmul.f32 1.442695, %v837_v14 }
 0x1a0   : > { %v883_v15 = vadd.f32 1.0, %v1190_v63  ;;  %1191 = vpow2.f32 %v854_v61 }
 0x1a1   : > { %1193 = vrcp.f32 %v882_v0  ;;  %v790_v16 = vpop.f32.mrf.mxu0 }
 0x1a2   : > { %1195 = vrcp.f32 %v883_v15  ;;  %v791_v27 = vadd.f32 %v790_v16, %v717_v5  ;;  %v819_v28 = vpop.f32.mrf.mxu1 }
 0x1a3   : > { %1197 = vpow2.f32 %v856_v3  ;;  %v820_v59 = vadd.f32 %v819_v28, %v717_v5  ;;  %v732_v3 = vpop.permute.xlu1 %731 }
 0x1a4   : > { %v838_v21 = vsub.f32 0.0, %v791_v27 }
 0x1a5   : > { %v839_v62 = vsub.f32 0.0, %v820_v59 }
 0x1a6   : > { %v1192_v26 = vpop.eup %1191  ;;  %v858_v1 = vmul.f32 1.442695, %v838_v21 }
 0x1a7   : > { %v1194_v7 = vpop.eup %1193  ;;  %v884_v19 = vadd.f32 1.0, %v1192_v26  ;;  %v860_v42 = vmul.f32 1.442695, %v839_v62 }
 0x1a8   : > { %v1196_v20 = vpop.eup %1195  ;;  %v914_v43 = vmul.f32 %v1194_v7, %v1424_v46  ;;  %1199 = vpow2.f32 %v858_v1 }
 0x1a9   : > { %v1198_v8 = vpop.eup %1197  ;;  %v915_v17 = vmul.f32 %v1196_v20, %v1433_v49  ;;  %1201 = vrcp.f32 %v884_v19  ;;  %v792_v29 = vpop.f32.mrf.mxu0 }
 0x1aa   : > { %930 = vst [vmem:[%s1546_s13] sm:$0xff] %v914_v43  ;;  %v885_v10 = vadd.f32 1.0, %v1198_v8  ;;  %1203 = vpow2.f32 %v860_v42  ;;  %v793_v18 = vadd.f32 %v792_v29, %v722_v9  ;;  %v821_v32 = vpop.f32.mrf.mxu1  ;;  %v737_v20 = vpop.permute.xlu2 %736 }
 0x1ab   : > { %931 = vst [vmem:[%s1546_s13 + $0x8] sm:$0xff] %v915_v17  ;;  %v822_v6 = vadd.f32 %v821_v32, %v722_v9 }
 0x1ac   : > { %1205 = vrcp.f32 %v885_v10  ;;  %v840_v11 = vsub.f32 0.0, %v793_v18 }
 0x1ad   : > { %v841_v2 = vsub.f32 0.0, %v822_v6 }
 0x1ae   : > { %v1200_v4 = vpop.eup %1199  ;;  %v862_v46 = vmul.f32 1.442695, %v840_v11 }
 0x1af   : > { %v1202_v12 = vpop.eup %1201  ;;  %v886_v35 = vadd.f32 1.0, %v1200_v4  ;;  %v864_v36 = vmul.f32 1.442695, %v841_v2 }
 0x1b0   : > { %v1204_v41 = vpop.eup %1203  ;;  %v916_v49 = vmul.f32 %v1202_v12, %v1427_v47  ;;  %1207 = vpow2.f32 %v862_v46 }
 0x1b1   : > { %1209 = vrcp.f32 %v886_v35  ;;  %v887_v45 = vadd.f32 1.0, %v1204_v41  ;;  %v795_v48 = vpop.f32.mrf.mxu0  ;;  %v742_v35 = vpop.permute.xlu0 %741 }
 0x1b2   : > { %v1206_v51 = vpop.eup %1205  ;;  %932 = vst [vmem:[%s1546_s13 + $0x10] sm:$0xff] %v916_v49  ;;  %1211 = vpow2.f32 %v864_v36  ;;  %v796_v52 = vadd.f32 %v795_v48, %v727_v44  ;;  %v824_v53 = vpop.f32.mrf.mxu1 }
 0x1b3   : > { %v917_v54 = vmul.f32 %v1206_v51, %v1436_v50  ;;  %1213 = vrcp.f32 %v887_v45  ;;  %v825_v55 = vadd.f32 %v824_v53, %v727_v44 }
 0x1b4   : > { %v842_v56 = vsub.f32 0.0, %v796_v52 }
 0x1b5   : > { %933 = vst [vmem:[%s1546_s13 + $0x18] sm:$0xff] %v917_v54  ;;  %v843_v57 = vsub.f32 0.0, %v825_v55 }
 0x1b6   : > { %v1208_v58 = vpop.eup %1207  ;;  %v866_v47 = vmul.f32 1.442695, %v842_v56 }
 0x1b7   : > { %v1210_v13 = vpop.eup %1209  ;;  %v888_v14 = vadd.f32 1.0, %v1208_v58  ;;  %v868_v60 = vmul.f32 1.442695, %v843_v57 }
 0x1b8   : > { %v1212_v61 = vpop.eup %1211  ;;  %v918_v63 = vmul.f32 %v1210_v13, %v1400_v37  ;;  %1215 = vpow2.f32 %v866_v47 }
 0x1b9   : > { %v1214_v0 = vpop.eup %1213  ;;  %1217 = vrcp.f32 %v888_v14  ;;  %v889_v50 = vadd.f32 1.0, %v1212_v61  ;;  %v797_v15 = vpop.f32.mrf.mxu0 }
 0x1ba   : > { %934 = vst [vmem:[%s1546_s13 + $0x20] sm:$0xff] %v918_v63  ;;  %v919_v5 = vmul.f32 %v1214_v0, %v1407_v39  ;;  %1219 = vpow2.f32 %v868_v60  ;;  %v798_v16 = vadd.f32 %v797_v15, %v732_v3  ;;  %v826_v27 = vpop.f32.mrf.mxu1 }
 0x1bb   : > { %1221 = vrcp.f32 %v889_v50  ;;  %v827_v28 = vadd.f32 %v826_v27, %v732_v3 }
 0x1bc   : > { %935 = vst [vmem:[%s1546_s13 + $0x28] sm:$0xff] %v919_v5  ;;  %v844_v59 = vsub.f32 0.0, %v798_v16 }
 0x1bd   : > { %v845_v21 = vsub.f32 0.0, %v827_v28 }
 0x1be   : > { %v1216_v62 = vpop.eup %1215  ;;  %v870_v37 = vmul.f32 1.442695, %v844_v59 }
 0x1bf   : > { %v1218_v26 = vpop.eup %1217  ;;  %v890_v1 = vadd.f32 1.0, %v1216_v62  ;;  %v872_v7 = vmul.f32 1.442695, %v845_v21 }
 0x1c0   : > { %v1220_v19 = vpop.eup %1219  ;;  %v920_v42 = vmul.f32 %v1218_v26, %v1403_v38  ;;  %1223 = vpow2.f32 %v870_v37 }
 0x1c1   : > { %v1222_v39 = vpop.eup %1221  ;;  %1225 = vrcp.f32 %v890_v1  ;;  %v891_v43 = vadd.f32 1.0, %v1220_v19  ;;  %v800_v8 = vpop.f32.mrf.mxu0 }
 0x1c2   : > { %936 = vst [vmem:[%s1546_s13 + $0x30] sm:$0xff] %v920_v42  ;;  %v921_v9 = vmul.f32 %v1222_v39, %v1410_v40  ;;  %1227 = vpow2.f32 %v872_v7  ;;  %v801_v17 = vadd.f32 %v800_v8, %v737_v20  ;;  %v829_v29 = vpop.f32.mrf.mxu1 }
 0x1c3   : > { %1229 = vrcp.f32 %v891_v43  ;;  %v830_v10 = vadd.f32 %v829_v29, %v737_v20 }
 0x1c4   : > { %937 = vst [vmem:[%s1546_s13 + $0x38] sm:$0xff] %v921_v9  ;;  %v846_v18 = vsub.f32 0.0, %v801_v17 }
 0x1c5   : > { %v847_v32 = vsub.f32 0.0, %v830_v10 }
 0x1c6   : > { %v1224_v6 = vpop.eup %1223  ;;  %v874_v38 = vmul.f32 1.442695, %v846_v18 }
 0x1c7   : > { %v1226_v11 = vpop.eup %1225  ;;  %v892_v2 = vadd.f32 1.0, %v1224_v6  ;;  %v876_v4 = vmul.f32 1.442695, %v847_v32 }
 0x1c8   : > { %v1228_v46 = vpop.eup %1227  ;;  %v922_v12 = vmul.f32 %v1226_v11, %v1381_v30  ;;  %1231 = vpow2.f32 %v874_v38 }
 0x1c9   : > { %v1230_v40 = vpop.eup %1229  ;;  %1233 = vrcp.f32 %v892_v2  ;;  %v893_v36 = vadd.f32 1.0, %v1228_v46  ;;  %v802_v41 = vpop.f32.mrf.mxu0 }
 0x1ca   : > { %938 = vst [vmem:[%s1546_s13 + $0x40] sm:$0xff] %v922_v12  ;;  %v923_v49 = vmul.f32 %v1230_v40, %v1390_v33  ;;  %1235 = vpow2.f32 %v876_v4  ;;  %v803_v44 = vadd.f32 %v802_v41, %v742_v35  ;;  %v831_v45 = vpop.f32.mrf.mxu1 }
 0x1cb   : > { %1237 = vrcp.f32 %v893_v36  ;;  %v832_v48 = vadd.f32 %v831_v45, %v742_v35 }
 0x1cc   : > { %939 = vst [vmem:[%s1546_s13 + $0x48] sm:$0xff] %v923_v49  ;;  %v848_v51 = vsub.f32 0.0, %v803_v44 }
 0x1cd   : > { %v849_v52 = vsub.f32 0.0, %v832_v48 }
 0x1ce   : > { %v1232_v30 = vpop.eup %1231  ;;  %v878_v53 = vmul.f32 1.442695, %v848_v51 }
 0x1cf   : > { %v1234_v54 = vpop.eup %1233  ;;  %v894_v55 = vadd.f32 1.0, %v1232_v30  ;;  %v880_v56 = vmul.f32 1.442695, %v849_v52 }
 0x1d0   : > { %v1236_v57 = vpop.eup %1235  ;;  %v924_v58 = vmul.f32 %v1234_v54, %v1384_v31  ;;  %1239 = vpow2.f32 %v878_v53 }
 0x1d1   : > { %v1238_v33 = vpop.eup %1237  ;;  %1241 = vrcp.f32 %v894_v55  ;;  %v895_v47 = vadd.f32 1.0, %v1236_v57 }
 0x1d2   : > { %940 = vst [vmem:[%s1546_s13 + $0x50] sm:$0xff] %v924_v58  ;;  %v925_v13 = vmul.f32 %v1238_v33, %v1393_v34  ;;  %1243 = vpow2.f32 %v880_v56 }
 0x1d3   : > { %1245 = vrcp.f32 %v895_v47 }
 0x1d4   : > { %941 = vst [vmem:[%s1546_s13 + $0x58] sm:$0xff] %v925_v13 }
 0x1d6   : > { %v1240_v14 = vpop.eup %1239 }
 0x1d7   : > { %v1242_v60 = vpop.eup %1241  ;;  %v896_v61 = vadd.f32 1.0, %v1240_v14 }
 0x1d8   : > { %v1244_v63 = vpop.eup %1243  ;;  %v926_v31 = vmul.f32 %v1242_v60, %v1365_v22 }
 0x1d9   : > { %v1246_v0 = vpop.eup %1245  ;;  %1247 = vrcp.f32 %v896_v61  ;;  %v897_v3 = vadd.f32 1.0, %v1244_v63 }
 0x1da   : > { %942 = vst [vmem:[%s1546_s13 + $0x60] sm:$0xff] %v926_v31  ;;  %v927_v50 = vmul.f32 %v1246_v0, %v1371_v24 }
 0x1db   : > { %1249 = vrcp.f32 %v897_v3 }
 0x1dc   : > { %943 = vst [vmem:[%s1546_s13 + $0x68] sm:$0xff] %v927_v50 }
 0x1df   : > { %v1248_v34 = vpop.eup %1247 }
 0x1e0   : > { %v928_v15 = vmul.f32 %v1248_v34, %v1368_v23 }
 0x1e1   : > { %v1250_v5 = vpop.eup %1249 }
 0x1e2   : > { %944 = vst [vmem:[%s1546_s13 + $0x70] sm:$0xff] %v928_v15  ;;  %v929_v16 = vmul.f32 %v1250_v5, %v1374_v25 }
 0x1e4   : > { %945 = vst [vmem:[%s1546_s13 + $0x78] sm:$0xff] %v929_v16 }
 0x1e5 PF: > { %s17_s26 = sadd.s32 1, %s1273_s26   ;;  %s1597_s24 = smov %s1269_s25 }
 0x1e6   : > { %p14_p5 = scmp.ge.s32.totalorder %s17_s26, 4   ;;  %s1598_s25 = smov %s1600_s27 }
 0x1e8   :  { %16 = sbr.rel (!%p14_p5) target bundleno = 2 (0x2), region = 81 }

</bundles_post_ra>
